<compile_context>
chip_gen: v7x
topology: tpu7x:2x2x1
jax: 0.10.0
libtpu: 0.0.40
codegen_flags: <defaults>
</compile_context>

<pallas_src>
import functools

import jax
import jax.numpy as jnp
from jax.experimental import pallas as pl
from jax.experimental.pallas import tpu as pltpu

FORCE_STD = 0.5
STRESS_STD = 0.2
EV_A3_TO_GPA = 160.21766208

_LANE = 512            # lane-dense width (multiple of 128)
_MAX_TILE_ROWS = 1024  # 1024 x 512 x 4B = 2 MiB per buffer -> safe on v5e/v6e/v7x


# --------------------------- kernels ---------------------------------------
def _forces_kernel(fgrad_ref, forces_ref, *, neg_inv_force_std):
    # forces = dE/dpos * (-1/force_std)   (negate + std-divide folded into one mul)
    x = fgrad_ref[...].astype(jnp.float32)
    forces_ref[...] = (x * jnp.float32(neg_inv_force_std)).astype(forces_ref.dtype)


def _stress_kernel(sgrad_ref, scale_ref, stress_ref):
    # stresses = dE/dstrain * (160.21766208 / (stress_std * volume[b]))
    x = sgrad_ref[...].astype(jnp.float32)
    stress_ref[...] = (x * scale_ref[...]).astype(stress_ref.dtype)


# --------------------------- pallas wrappers --------------------------------
def _forces_pallas(force_grad, force_std):
    """-(force_grad / force_std), computed over a lane-dense flattened view."""
    B, N, C = force_grad.shape
    total = B * N * C
    chunk = 8 * _LANE                                   # sublane x lane alignment
    padded = ((total + chunk - 1) // chunk) * chunk
    flat = force_grad.reshape(total)
    if padded != total:
        # One-time pad copy only when B*N*3 is not already (8*512)-aligned.
        flat = jnp.pad(flat, (0, padded - total))
    rows = padded // _LANE
    tile_rows = min(_MAX_TILE_ROWS, rows)               # multiple of 8 by construction
    flat2d = flat.reshape(rows, _LANE)

    kernel = functools.partial(
        _forces_kernel, neg_inv_force_std=float(-1.0 / force_std)
    )
    out = pl.pallas_call(
        kernel,
        out_shape=jax.ShapeDtypeStruct((rows, _LANE), jnp.float32),
        grid_spec=pltpu.PrefetchScalarGridSpec(
            num_scalar_prefetch=0,
            grid=(pl.cdiv(rows, tile_rows),),
            in_specs=[pl.BlockSpec((tile_rows, _LANE), lambda i: (i, 0))],
            out_specs=pl.BlockSpec((tile_rows, _LANE), lambda i: (i, 0)),
        ),
        compiler_params=pltpu.CompilerParams(
            dimension_semantics=("parallel",),          # lets v7x shard across both TCs
        ),
    )(flat2d)
    return out.reshape(padded)[:total].reshape(B, N, C)


def _stresses_pallas(stress_grad, volume, stress_std):
    """(1/volume) * (stress_grad / stress_std) * 160.21766208 in one block."""
    B = stress_grad.shape[0]
    # Per-batch scalar scale precomputed on (B,) elements (trivial XLA op).
    scale = (EV_A3_TO_GPA / stress_std) / volume.astype(jnp.float32)      # (B,)
    out = pl.pallas_call(
        _stress_kernel,
        out_shape=jax.ShapeDtypeStruct((B, 9), jnp.float32),
        grid_spec=pltpu.PrefetchScalarGridSpec(
            num_scalar_prefetch=0,
            grid=(1,),
            in_specs=[
                pl.BlockSpec((B, 9), lambda i: (0, 0)),
                pl.BlockSpec((B, 1), lambda i: (0, 0)),
            ],
            out_specs=pl.BlockSpec((B, 9), lambda i: (0, 0)),
        ),
        compiler_params=pltpu.CompilerParams(
            dimension_semantics=("arbitrary",),
        ),
    )(stress_grad.reshape(B, 9), scale.reshape(B, 1))
    return out.reshape(B, 3, 3)


def gradient_head(force_grad, stress_grad, volume,
                  force_std=FORCE_STD, stress_std=STRESS_STD):
    """Pallas implementation of GradientHead's post-autograd elementwise math.

    force_grad : (B, N, 3)  dE/dpos
    stress_grad: (B, 3, 3)  dE/dstrain
    volume     : (B,)
    returns (forces (B,N,3) f32, stresses (B,3,3) f32)
    """
    forces = _forces_pallas(force_grad, force_std)
    stresses = _stresses_pallas(stress_grad, volume, stress_std)
    return forces, stresses


# ---- synthetic differentiable "energy" to generate the gradients (glue) ----
def _energy_fn(pos, strain):
    # pos: (B, N, 3), strain: (B, 3, 3) -> energy: (B,)
    eye = jnp.eye(3, dtype=pos.dtype)
    deformed = jnp.einsum("bnj,bjk->bnk", pos, eye + strain)
    e = jnp.sum(deformed * deformed, axis=(1, 2))
    e = e + 0.1 * jnp.sum(jnp.sin(deformed), axis=(1, 2))
    return e


def gradient_head_from_energy(pos, strain, volume):
    # torch.autograd.grad(energy, [pos, strain], grad_outputs=ones_like(energy))
    # == grad of sum(energy) w.r.t. (pos, strain) since batches are independent.
    # TODO(synk): create_graph=self.training (higher-order grads) is handled by
    # JAX's tracing automatically and has no explicit Pallas equivalent.
    force_grad, stress_grad = jax.grad(
        lambda p, s: jnp.sum(_energy_fn(p, s)), argnums=(0, 1)
    )(pos, strain)
    return gradient_head(force_grad, stress_grad, volume)


def _reference(force_grad, stress_grad, volume):
    forces = -(force_grad / FORCE_STD)
    stresses = (1.0 / volume[:, None, None]) * (stress_grad / STRESS_STD) * EV_A3_TO_GPA
    return forces, stresses


if __name__ == "__main__":
    key = jax.random.PRNGKey(0)
    k1, k2, k3 = jax.random.split(key, 3)

    B, N = 2, 8
    pos = jax.random.normal(k1, (B, N, 3), dtype=jnp.float32)
    strain = 0.01 * jax.random.normal(k2, (B, 3, 3), dtype=jnp.float32)
    volume = 10.0 + jax.random.uniform(k3, (B,), dtype=jnp.float32)

    forces, stresses = gradient_head_from_energy(pos, strain, volume)
    jax.block_until_ready((forces, stresses))

    # check against a plain-JAX reference of the module math
    fg, sg = jax.grad(lambda p, s: jnp.sum(_energy_fn(p, s)), argnums=(0, 1))(pos, strain)
    ref_f, ref_s = _reference(fg, sg, volume)
    assert forces.shape == (B, N, 3) and stresses.shape == (B, 3, 3)
    assert jnp.allclose(forces, ref_f, atol=1e-5, rtol=1e-5)
    assert jnp.allclose(stresses, ref_s, atol=1e-4, rtol=1e-4)

    print("KERNEL_OK")
</pallas_src>

<mosaic_0001>
module attributes {stable_mosaic.version = 11 : i64} {
  func.func @_forces_kernel(%arg0: i32, %arg1: memref<8x512xf32, #tpu.memory_space<vmem>>, %arg2: memref<8x512xf32, #tpu.memory_space<vmem>>) attributes {dimension_semantics = [#tpu.dimension_semantics<parallel>], iteration_bounds = array<i64: 1>, scalar_prefetch = 0 : i64, scratch_operands = 0 : i64, tpu.core_type = #tpu.core_type<tc>, window_params = [{transform_indices = @transform_0, window_bounds = array<i64: 8, 512>}, {transform_indices = @transform_1, window_bounds = array<i64: 8, 512>}]} {
    %c0 = arith.constant 0 : index
    %c0_0 = arith.constant 0 : index
    %0 = vector.load %arg1[%c0, %c0_0] : memref<8x512xf32, #tpu.memory_space<vmem>>, vector<8x512xf32>
    %cst = arith.constant -2.000000e+00 : f32
    %1 = vector.broadcast %cst : f32 to vector<8x512xf32>
    %2 = arith.mulf %0, %1 : vector<8x512xf32>
    %c0_1 = arith.constant 0 : index
    %c0_2 = arith.constant 0 : index
    %3 = vector.load %arg2[%c0_1, %c0_2] : memref<8x512xf32, #tpu.memory_space<vmem>>, vector<8x512xf32>
    tpu.vector_store %arg2[%c0_1, %c0_2], %2 {strides = array<i32>} : memref<8x512xf32, #tpu.memory_space<vmem>>, vector<8x512xf32>,
    return
  }
  func.func @transform_0(%arg0: i32) -> (i32, i32) {
    %c0_i32 = arith.constant 0 : i32
    %c0_i32_0 = arith.constant 0 : i32
    return %arg0, %c0_i32 : i32, i32
  }
  func.func @transform_1(%arg0: i32) -> (i32, i32) {
    %c0_i32 = arith.constant 0 : i32
    %c0_i32_0 = arith.constant 0 : i32
    return %arg0, %c0_i32 : i32, i32
  }
}

</mosaic_0001>

<bundles_post_ra>
// kernel: tpu_custom_call.1
= control target key start
LH: loop header
LB: loop body
LE: loop exit
PB: predicated region body
PF: predicated region fallthrough
CT: control target
= control target key end

     0   :  { %6 = vsyncpa [#allocation3], 0  ;;  %s134_s0 = inlined_call_operand.hbm [shape: f32[8,512], index: 0, kind: input, shape index: {}]   ;;  %s135_s1 = inlined_call_operand.hbm [shape: f32[8,512], index: 1, kind: output, shape index: {}]  }
   0x1   :  { %7 = vsyncpa [#allocation4], 0  ;;  %s98_s6 = smov [#allocation2]   ;;  %s50_s10 = scalar_lea.hbm %s134_s0, 512 }
   0x2   :  { %s14_s7 = sshll.u32 %s98_s6, 4  ;;  %p51_p0 = scmp.ne.s32.totalorder %s134_s0, %s50_s10  ;;  %s15_s7 = int_to_ptr.vmem [resolvable:$true] %s14_s7 }
   0x3   :  { %p54_p1 = scmp.lt.u32.totalorder %s50_s10, %s134_s0 }
   0x5   :  { %p56_p2 = pnand %p54_p1, %p51_p0 }
   0x7   :  { %59 = shalt.err (!%p56_p2)
}
   0x8   :  { %s60_s15 = scalar_lea.vmem %s15_s7, 512  ;;  %p65_p4 = scmp.lt.s32.totalorder %s15_s7, %s15_s7 }
   0x9   :  { %p61_p3 = scmp.ne.s32.totalorder %s15_s7, %s60_s15  ;;  %p66_p5 = scmp.lt.s32.totalorder %s60_s15, %s60_s15 }
   0xb   :  { %p67_p6 = por %p66_p5, %p65_p4 }
   0xd   :  { %p68_p7 = pnand %p67_p6, %p61_p3 }
   0xf   :  { %71 = shalt.err (!%p68_p7)
}
  0x10   :  { %17 = dma.hbm_to_vmem [thread:$0]  %s134_s0, 512, %s15_s7, [#allocation3]  }
  0x11   :  { %94 = dma.done.wait [#allocation3], 512  }
  0x12   :  { %95 = vsyncadd [#allocation3], 4294966784  ;;  %s99_s18 = smov [#allocation5]   ;;  %v21_v0 = vld [vmem:[#allocation2] sm:$0xff]  ;;  %v22_v1 = vld [vmem:[#allocation2 + $0x8] sm:$0xff] }
  0x13   :  { %s39_s19 = sshll.u32 %s99_s18, 4  ;;  %v23_v2 = vld [vmem:[#allocation2 + $0x10] sm:$0xff]  ;;  %v25_v3 = vmul.f32 -2.0, %v21_v0  ;;  %v26_v4 = vmul.f32 -2.0, %v22_v1  ;;  %v24_v6 = vld [vmem:[#allocation2 + $0x18] sm:$0xff]  ;;  %s40_s19 = int_to_ptr.vmem [resolvable:$true] %s39_s19 }
  0x14   :  { %v27_v5 = vmul.f32 -2.0, %v23_v2  ;;  %v28_v7 = vmul.f32 -2.0, %v24_v6  ;;  %s72_s20 = scalar_lea.vmem %s40_s19, 512  ;;  %p77_p9 = scmp.lt.s32.totalorder %s40_s19, %s40_s19 }
  0x15   :  { %29 = vst [vmem:[#allocation5] sm:$0xff] %v25_v3  ;;  %30 = vst [vmem:[#allocation5 + $0x8] sm:$0xff] %v26_v4  ;;  %p73_p8 = scmp.ne.s32.totalorder %s40_s19, %s72_s20  ;;  %p78_p10 = scmp.lt.s32.totalorder %s72_s20, %s72_s20 }
  0x16   :  { %31 = vst [vmem:[#allocation5 + $0x10] sm:$0xff] %v27_v5  ;;  %32 = vst [vmem:[#allocation5 + $0x18] sm:$0xff] %v28_v7 }
  0x17   :  { %p79_p11 = por %p78_p10, %p77_p9 }
  0x19   :  { %p80_p12 = pnand %p79_p11, %p73_p8 }
  0x1b   :  { %83 = shalt.err (!%p80_p12)
}
  0x1c   :  { %s84_s22 = scalar_lea.hbm %s135_s1, 512 }
  0x1d   :  { %p85_p13 = scmp.ne.s32.totalorder %s135_s1, %s84_s22  ;;  %p88_p0 = scmp.lt.u32.totalorder %s84_s22, %s135_s1 }
  0x1f   :  { %p90_p1 = pnand %p88_p0, %p85_p13 }
  0x21   :  { %93 = shalt.err (!%p90_p1)
}
  0x22   :  { %42 = dma.vmem_to_hbm [thread:$0]  %s40_s19, 512, %s135_s1, [#allocation4]  }
  0x23   :  { %96 = dma.done.wait [#allocation4], 512  }
  0x24   :  { %97 = vsyncadd [#allocation4], 4294966784 }
  0x25   :  { %46 = vsyncpa [#allocation3], 1 }
  0x26   :  { %47 = vsyncpa [#allocation4], 1 }

</bundles_post_ra>
